<compile_context>
chip_gen: v5e
topology: v5e:2x2
jax: 0.10.0
libtpu: 0.0.40
codegen_flags: <defaults>
</compile_context>

<pallas_src>
import jax
import jax.numpy as jnp
from jax import lax
from jax.experimental import pallas as pl
from jax.experimental.pallas import tpu as pltpu


def _pick_time_chunk(seq_len, batch_p, hid, budget_bytes=12 << 20, max_steps=128):
    """Largest divisor of seq_len whose double-buffered chunk footprint fits the VMEM budget."""
    # Per time step (one direction at a time on the grid):
    #   in : 2 buffers * Bp * 3H * 2 B (bf16 gate inputs)
    #   out: 2 buffers * Bp * H  * 4 B (f32 hidden outputs)
    per_step = 2 * batch_p * 3 * hid * 2 + 2 * batch_p * hid * 4
    cap = int(max(1, min(seq_len, max_steps, budget_bytes // max(per_step, 1))))
    for tc in range(cap, 0, -1):
        if seq_len % tc == 0:
            return tc
    return 1


# ----------------------------------------------------------------------------------
# Pallas kernel: one GRU direction, one chunk of Tc time steps.
# Grid = (direction d, chunk c); the backward direction's gate inputs are pre-reversed
# in time by the wrapper, so both directions run "forward" over their local time axis.
#   g_ref   : (Tc, Bp, 3H) bf16  precomputed x @ W_ih for this direction/chunk ([r,z,n])
#   whh_ref : (H, 3H)      bf16  recurrent weights for this direction ([r,z,n])
#   bin_ref : (1, 3H)      f32   fused input-side bias [b_ih_r+b_hh_r, b_ih_z+b_hh_z, b_ih_n]
#   bhn_ref : (1, H)       f32   b_hh_n (must stay inside r * (...))
# Outputs: per-step hidden (Tc, Bp, H) and (under pl.when on the last chunk) the final
# hidden state (Bp, H).  h_scratch carries the hidden state across chunks.
# ----------------------------------------------------------------------------------
def _gru_dir_kernel(g_ref, whh_ref, bin_ref, bhn_ref, out_ref, hlast_ref, h_scratch):
    c = pl.program_id(1)
    n_chunks = pl.num_programs(1)
    Tc, Bp, H3 = g_ref.shape
    H = H3 // 3

    @pl.when(c == 0)
    def _init():
        h_scratch[...] = jnp.zeros_like(h_scratch)

    # Resident weights / biases: loaded + broadcast once per chunk (hoisted out of the loop;
    # JAX does not CSE broadcast_in_dim inside the unrolled body).
    whh = whh_ref[...]                                        # (H, 3H) bf16
    bin_b = jnp.broadcast_to(bin_ref[...], (Bp, H3))          # (Bp, 3H) f32
    bhn_b = jnp.broadcast_to(bhn_ref[...], (Bp, H))           # (Bp, H)  f32

    def step(i, h):
        g = g_ref[i].astype(jnp.float32) + bin_b              # (Bp, 3H) gate inputs (+ r/z/n bias)
        hp = jnp.dot(h.astype(jnp.bfloat16), whh,
                     preferred_element_type=jnp.float32)      # (Bp, 3H) recurrent projection
        # PyTorch GRU semantics; gate order [r, z, n]; b_hn stays inside r*(...).
        r = jax.nn.sigmoid(g[:, :H] + hp[:, :H])
        z = jax.nn.sigmoid(g[:, H:2 * H] + hp[:, H:2 * H])
        n = jnp.tanh(g[:, 2 * H:] + r * (hp[:, 2 * H:] + bhn_b))
        h_new = (1.0 - z) * n + z * h
        out_ref[i] = h_new
        return h_new

    # Bounded unroll: keeps LLO visibility without blowing the 64-vreg file at real H.
    h_last = lax.fori_loop(0, Tc, step, h_scratch[...], unroll=min(Tc, 8))
    h_scratch[...] = h_last

    @pl.when(c == n_chunks - 1)
    def _fin():
        hlast_ref[...] = h_last


# ----------------------------------------------------------------------------------
# Wrapper: embedding gather (bf16), hoisted per-direction input projection, recurrence
# kernel, final FC + tanh.
# ----------------------------------------------------------------------------------
def encoder_forward(src, params):
    """src: (S, B) int32 token ids.  Returns (outputs (S,B,enc_hid), hidden (B,dec_hid))."""
    emb_table = params["embedding"]
    E = emb_table.shape[1]
    H = params["w_hh_f"].shape[-1]          # per-direction hidden size
    S, B = src.shape
    Bp = ((B + 7) // 8) * 8                 # sublane-align the batch dim

    # Embedding gather directly in bf16 (operand of the bf16 projection anyway).
    # TODO(synk): nn.Dropout is stochastic in train mode; implemented as eval-mode identity.
    emb = jnp.take(emb_table.astype(jnp.bfloat16), src, axis=0)        # (S, B, E) bf16
    if Bp != B:
        emb = jnp.pad(emb, ((0, 0), (0, Bp - B), (0, 0)))

    def pack_ih(w):                         # (3, E, H) [r,z,n] -> (E, 3H) bf16
        return jnp.transpose(w, (1, 0, 2)).reshape(E, 3 * H).astype(jnp.bfloat16)

    def pack_hh(w):                         # (3, H, H) [r,z,n] -> (H, 3H) bf16
        return jnp.transpose(w, (1, 0, 2)).reshape(H, 3 * H).astype(jnp.bfloat16)

    # Hoisted input projections, one per direction; backward one produced already time-reversed
    # so the kernel runs both directions "forward" over its local time axis.
    x_f = emb.reshape(S * Bp, E)
    x_b = emb[::-1].reshape(S * Bp, E)
    gin_f = jnp.dot(x_f, pack_ih(params["w_ih_f"]),
                    preferred_element_type=jnp.float32).reshape(S, Bp, 3 * H)
    gin_b = jnp.dot(x_b, pack_ih(params["w_ih_b"]),
                    preferred_element_type=jnp.float32).reshape(S, Bp, 3 * H)
    gin = jnp.stack([gin_f, gin_b], axis=0).astype(jnp.bfloat16)        # (2, S, Bp, 3H) bf16

    # Per-direction recurrent weights and fused biases (resident kernel inputs).
    whh = jnp.stack([pack_hh(params["w_hh_f"]), pack_hh(params["w_hh_b"])], axis=0)  # (2,H,3H)

    def fuse_bias(b_ih, b_hh):              # (3,1,H) each -> (1,3H): [bir+bhr, biz+bhz, bin]
        return jnp.concatenate([b_ih[0] + b_hh[0], b_ih[1] + b_hh[1], b_ih[2]], axis=-1)

    bin_s = jnp.stack([fuse_bias(params["b_ih_f"], params["b_hh_f"]),
                       fuse_bias(params["b_ih_b"], params["b_hh_b"])], axis=0)       # (2,1,3H)
    bhn_s = jnp.stack([params["b_hh_f"][2], params["b_hh_b"][2]], axis=0)            # (2,1,H)

    Tc = _pick_time_chunk(S, Bp, H)
    nC = S // Tc

    out, hlast = pl.pallas_call(
        _gru_dir_kernel,
        out_shape=(
            jax.ShapeDtypeStruct((2, S, Bp, H), jnp.float32),   # per-step hidden (bwd reversed)
            jax.ShapeDtypeStruct((2, Bp, H), jnp.float32),      # final hidden per direction
        ),
        grid_spec=pltpu.PrefetchScalarGridSpec(
            num_scalar_prefetch=0,
            grid=(2, nC),
            in_specs=[
                pl.BlockSpec((None, Tc, Bp, 3 * H), lambda d, c: (d, c, 0, 0)),  # gate inputs
                pl.BlockSpec((None, H, 3 * H), lambda d, c: (d, 0, 0)),          # W_hh (resident)
                pl.BlockSpec((None, 1, 3 * H), lambda d, c: (d, 0, 0)),          # fused bias
                pl.BlockSpec((None, 1, H), lambda d, c: (d, 0, 0)),              # b_hh_n
            ],
            out_specs=[
                pl.BlockSpec((None, Tc, Bp, H), lambda d, c: (d, c, 0, 0)),
                pl.BlockSpec((None, Bp, H), lambda d, c: (d, 0, 0)),
            ],
            scratch_shapes=[pltpu.VMEM((Bp, H), jnp.float32)],   # hidden carry (per direction)
        ),
        compiler_params=pltpu.CompilerParams(
            dimension_semantics=("parallel", "arbitrary"),       # directions -> cores on v7x
            vmem_limit_bytes=32 * 1024 * 1024,
        ),
    )(gin, whh, bin_s, bhn_s)

    out_f = out[0, :, :B, :]                                     # (S, B, H)
    out_b = out[1, ::-1, :B, :]                                  # un-reverse bwd time axis
    outputs = jnp.concatenate([out_f, out_b], axis=-1)           # (S, B, 2H)
    hcat = jnp.concatenate([hlast[0, :B], hlast[1, :B]], axis=-1)  # (B, 2H)
    hidden = jnp.tanh(jnp.dot(hcat, params["fc_w"]) + params["fc_b"])  # (B, D)
    return outputs, hidden


# ----------------------------------------------------------------------------------
# Pure-JAX reference (same precision policy: bf16 matmul operands, bf16-streamed gate
# inputs, f32 elementwise math)
# ----------------------------------------------------------------------------------
def _bdot(a, b):
    return jnp.dot(a.astype(jnp.bfloat16), b.astype(jnp.bfloat16),
                   preferred_element_type=jnp.float32)


def _round_bf16(x):
    return x.astype(jnp.bfloat16).astype(jnp.float32)


def _gru_cell_ref(x, h, wih, whh, bih, bhh):
    i_r = _round_bf16(_bdot(x, wih[0])) + bih[0]
    i_z = _round_bf16(_bdot(x, wih[1])) + bih[1]
    i_n = _round_bf16(_bdot(x, wih[2])) + bih[2]
    h_r = _bdot(h, whh[0]) + bhh[0]
    h_z = _bdot(h, whh[1]) + bhh[1]
    h_n = _bdot(h, whh[2]) + bhh[2]
    r = jax.nn.sigmoid(i_r + h_r)
    z = jax.nn.sigmoid(i_z + h_z)
    n = jnp.tanh(i_n + r * h_n)
    return (1.0 - z) * n + z * h


def encoder_forward_ref(src, params):
    embedded = jnp.take(params["embedding"], src, axis=0).astype(jnp.float32)
    S, B, _ = embedded.shape
    H = params["w_hh_f"].shape[-1]

    def run_dir(xs, wih, whh, bih, bhh):
        def step(h, x):
            h_new = _gru_cell_ref(x, h, wih, whh, bih, bhh)
            return h_new, h_new
        h0 = jnp.zeros((B, H), jnp.float32)
        h_last, ys = lax.scan(step, h0, xs)
        return ys, h_last

    ys_f, hf = run_dir(embedded, params["w_ih_f"], params["w_hh_f"],
                       params["b_ih_f"], params["b_hh_f"])
    ys_b, hb = run_dir(embedded[::-1], params["w_ih_b"], params["w_hh_b"],
                       params["b_ih_b"], params["b_hh_b"])
    outputs = jnp.concatenate([ys_f, ys_b[::-1]], axis=-1)
    h_cat = jnp.concatenate([hf, hb], axis=1)
    hidden = jnp.tanh(h_cat @ params["fc_w"] + params["fc_b"])
    return outputs, hidden


# ----------------------------------------------------------------------------------
# Deterministic parameter init (PyTorch-style uniform(-1/sqrt(H), 1/sqrt(H)) for GRU/fc)
# ----------------------------------------------------------------------------------
def make_params(key, inp_dim, emb_dim, enc_hid_dim, dec_hid_dim):
    H = enc_hid_dim // 2
    keys = jax.random.split(key, 16)
    k = iter(keys)
    u = lambda kk, shape, bound: jax.random.uniform(
        kk, shape, jnp.float32, minval=-bound, maxval=bound)
    bh = 1.0 / jnp.sqrt(H)
    bfc = 1.0 / jnp.sqrt(enc_hid_dim)
    return {
        "embedding": jax.random.normal(next(k), (inp_dim, emb_dim), jnp.float32),
        "w_ih_f": u(next(k), (3, emb_dim, H), bh),
        "w_hh_f": u(next(k), (3, H, H), bh),
        "b_ih_f": u(next(k), (3, 1, H), bh),
        "b_hh_f": u(next(k), (3, 1, H), bh),
        "w_ih_b": u(next(k), (3, emb_dim, H), bh),
        "w_hh_b": u(next(k), (3, H, H), bh),
        "b_ih_b": u(next(k), (3, 1, H), bh),
        "b_hh_b": u(next(k), (3, 1, H), bh),
        "fc_w": u(next(k), (enc_hid_dim, dec_hid_dim), bfc),
        "fc_b": u(next(k), (1, dec_hid_dim), bfc),
    }


if __name__ == "__main__":
    INP_DIM, EMB_DIM, ENC_HID, DEC_HID = 50, 32, 32, 32
    SEQ_LEN, BATCH = 8, 4

    key = jax.random.PRNGKey(0)
    pkey, skey = jax.random.split(key)
    params = make_params(pkey, INP_DIM, EMB_DIM, ENC_HID, DEC_HID)
    src = jax.random.randint(skey, (SEQ_LEN, BATCH), 0, INP_DIM, dtype=jnp.int32)

    fwd = jax.jit(encoder_forward)
    outputs, hidden = jax.block_until_ready(fwd(src, params))
    outputs_ref, hidden_ref = jax.block_until_ready(encoder_forward_ref(src, params))

    assert outputs.shape == (SEQ_LEN, BATCH, ENC_HID)
    assert hidden.shape == (BATCH, DEC_HID)
    # Kernel and reference share the bf16-matmul / bf16-streamed-gate-input precision policy;
    # residual differences are f32 accumulation/association order only.
    assert jnp.allclose(outputs, outputs_ref, rtol=2e-3, atol=2e-3)
    assert jnp.allclose(hidden, hidden_ref, rtol=2e-3, atol=2e-3)

    print("KERNEL_OK")
</pallas_src>

<mosaic_0001>
module attributes {stable_mosaic.version = 11 : i64} {
  func.func @_gru_dir_kernel(%arg0: i32, %arg1: i32, %arg2: memref<1x8x8x48xbf16, #tpu.memory_space<vmem>>, %arg3: memref<1x16x48xbf16, #tpu.memory_space<vmem>>, %arg4: memref<1x1x48xf32, #tpu.memory_space<vmem>>, %arg5: memref<1x1x16xf32, #tpu.memory_space<vmem>>, %arg6: memref<1x8x8x16xf32, #tpu.memory_space<vmem>>, %arg7: memref<1x8x16xf32, #tpu.memory_space<vmem>>, %arg8: memref<8x16xf32, #tpu.memory_space<vmem>>) attributes {dimension_semantics = [#tpu.dimension_semantics<parallel>, #tpu.dimension_semantics<arbitrary>], iteration_bounds = array<i64: 2, 1>, scalar_prefetch = 0 : i64, scratch_operands = 1 : i64, tpu.core_type = #tpu.core_type<tc>, window_params = [{transform_indices = @transform_0, window_bounds = array<i64: 1, 8, 8, 48>}, {transform_indices = @transform_1, window_bounds = array<i64: 1, 16, 48>}, {transform_indices = @transform_2, window_bounds = array<i64: 1, 1, 48>}, {transform_indices = @transform_3, window_bounds = array<i64: 1, 1, 16>}, {transform_indices = @transform_4, window_bounds = array<i64: 1, 8, 8, 16>}, {transform_indices = @transform_5, window_bounds = array<i64: 1, 8, 16>}]} {
    %c0_i32 = arith.constant 0 : i32
    %0 = arith.cmpi eq, %arg1, %c0_i32 : i32
    %1 = arith.extui %0 : i1 to i32
    %c0_i32_0 = arith.constant 0 : i32
    %2 = arith.cmpi ne, %1, %c0_i32_0 : i32
    scf.if %2 {
      %cst_95 = arith.constant 0.000000e+00 : f32
      %322 = vector.broadcast %cst_95 : f32 to vector<8x16xf32>
      %c0_96 = arith.constant 0 : index
      %c0_97 = arith.constant 0 : index
      %323 = vector.load %arg8[%c0_96, %c0_97] : memref<8x16xf32, #tpu.memory_space<vmem>>, vector<8x16xf32>
      tpu.vector_store %arg8[%c0_96, %c0_97], %322 {strides = array<i32>} : memref<8x16xf32, #tpu.memory_space<vmem>>, vector<8x16xf32>,
    } else {
    }
    %c0 = arith.constant 0 : index
    %c0_1 = arith.constant 0 : index
    %c0_2 = arith.constant 0 : index
    %3 = vector.load %arg3[%c0, %c0_1, %c0_2] : memref<1x16x48xbf16, #tpu.memory_space<vmem>>, vector<1x16x48xbf16>
    %4 = vector.shape_cast %3 : vector<1x16x48xbf16> to vector<16x48xbf16>
    %c0_3 = arith.constant 0 : index
    %c0_4 = arith.constant 0 : index
    %c0_5 = arith.constant 0 : index
    %5 = vector.load %arg4[%c0_3, %c0_4, %c0_5] : memref<1x1x48xf32, #tpu.memory_space<vmem>>, vector<1x1x48xf32>
    %6 = vector.shape_cast %5 : vector<1x1x48xf32> to vector<1x48xf32>
    %7 = vector.shape_cast %6 : vector<1x48xf32> to vector<1x48xf32>
    %8 = vector.broadcast %7 : vector<1x48xf32> to vector<8x48xf32>
    %c0_6 = arith.constant 0 : index
    %c0_7 = arith.constant 0 : index
    %c0_8 = arith.constant 0 : index
    %9 = vector.load %arg5[%c0_6, %c0_7, %c0_8] : memref<1x1x16xf32, #tpu.memory_space<vmem>>, vector<1x1x16xf32>
    %10 = vector.shape_cast %9 : vector<1x1x16xf32> to vector<1x16xf32>
    %11 = vector.shape_cast %10 : vector<1x16xf32> to vector<1x16xf32>
    %12 = vector.broadcast %11 : vector<1x16xf32> to vector<8x16xf32>
    %c0_9 = arith.constant 0 : index
    %c0_10 = arith.constant 0 : index
    %13 = vector.load %arg8[%c0_9, %c0_10] : memref<8x16xf32, #tpu.memory_space<vmem>>, vector<8x16xf32>
    %c0_i32_11 = arith.constant 0 : i32
    %c0_12 = arith.constant 0 : index
    %14 = arith.index_cast %c0_i32_11 : i32 to index
    %c0_13 = arith.constant 0 : index
    %c0_14 = arith.constant 0 : index
    %15 = vector.load %arg2[%c0_12, %14, %c0_13, %c0_14] : memref<1x8x8x48xbf16, #tpu.memory_space<vmem>>, vector<1x1x8x48xbf16>
    %16 = vector.shape_cast %15 : vector<1x1x8x48xbf16> to vector<8x48xbf16>
    %17 = arith.extf %16 : vector<8x48xbf16> to vector<8x48xf32>
    %18 = arith.addf %17, %8 : vector<8x48xf32>
    %19 = arith.truncf %13 : vector<8x16xf32> to vector<8x16xbf16>
    %cst = arith.constant dense<0.000000e+00> : vector<8x48xf32>
    %20 = tpu.matmul %19, %4, %cst {dimension_numbers = #tpu.dot_dimension_numbers<[1], [0], [0], [1], [0, 0, 1, 1], [], []>} : vector<8x16xbf16>, vector<16x48xbf16>, vector<8x48xf32> -> vector<8x48xf32>
    %21 = vector.extract_strided_slice %18 {offsets = [0, 0], sizes = [8, 16], strides = [1, 1]} : vector<8x48xf32> to vector<8x16xf32>
    %22 = vector.extract_strided_slice %20 {offsets = [0, 0], sizes = [8, 16], strides = [1, 1]} : vector<8x48xf32> to vector<8x16xf32>
    %23 = arith.addf %21, %22 : vector<8x16xf32>
    %24 = arith.negf %23 : vector<8x16xf32>
    %25 = math.exp %24 : vector<8x16xf32>
    %cst_15 = arith.constant 1.000000e+00 : f32
    %26 = vector.broadcast %cst_15 : f32 to vector<8x16xf32>
    %27 = arith.addf %26, %25 : vector<8x16xf32>
    %28 = arith.divf %26, %27 : vector<8x16xf32>
    %29 = vector.extract_strided_slice %18 {offsets = [0, 16], sizes = [8, 16], strides = [1, 1]} : vector<8x48xf32> to vector<8x16xf32>
    %30 = vector.extract_strided_slice %20 {offsets = [0, 16], sizes = [8, 16], strides = [1, 1]} : vector<8x48xf32> to vector<8x16xf32>
    %31 = arith.addf %29, %30 : vector<8x16xf32>
    %32 = arith.negf %31 : vector<8x16xf32>
    %33 = math.exp %32 : vector<8x16xf32>
    %cst_16 = arith.constant 1.000000e+00 : f32
    %34 = vector.broadcast %cst_16 : f32 to vector<8x16xf32>
    %35 = arith.addf %34, %33 : vector<8x16xf32>
    %36 = arith.divf %34, %35 : vector<8x16xf32>
    %37 = vector.extract_strided_slice %18 {offsets = [0, 32], sizes = [8, 16], strides = [1, 1]} : vector<8x48xf32> to vector<8x16xf32>
    %38 = vector.extract_strided_slice %20 {offsets = [0, 32], sizes = [8, 16], strides = [1, 1]} : vector<8x48xf32> to vector<8x16xf32>
    %39 = arith.addf %38, %12 : vector<8x16xf32>
    %40 = arith.mulf %28, %39 : vector<8x16xf32>
    %41 = arith.addf %37, %40 : vector<8x16xf32>
    %42 = math.tanh %41 : vector<8x16xf32>
    %cst_17 = arith.constant 1.000000e+00 : f32
    %43 = vector.broadcast %cst_17 : f32 to vector<8x16xf32>
    %44 = arith.subf %43, %36 : vector<8x16xf32>
    %45 = arith.mulf %44, %42 : vector<8x16xf32>
    %46 = arith.mulf %36, %13 : vector<8x16xf32>
    %47 = arith.addf %45, %46 : vector<8x16xf32>
    %c0_18 = arith.constant 0 : index
    %48 = arith.index_cast %c0_i32_11 : i32 to index
    %c0_19 = arith.constant 0 : index
    %c0_20 = arith.constant 0 : index
    %49 = vector.load %arg6[%c0_18, %48, %c0_19, %c0_20] : memref<1x8x8x16xf32, #tpu.memory_space<vmem>>, vector<1x1x8x16xf32>
    %50 = vector.shape_cast %49 : vector<1x1x8x16xf32> to vector<8x16xf32>
    %51 = vector.shape_cast %47 : vector<8x16xf32> to vector<1x1x8x16xf32>
    tpu.vector_store %arg6[%c0_18, %48, %c0_19, %c0_20], %51 {strides = array<i32>} : memref<1x8x8x16xf32, #tpu.memory_space<vmem>>, vector<1x1x8x16xf32>,
    %c1_i32 = arith.constant 1 : i32
    %c0_21 = arith.constant 0 : index
    %52 = arith.index_cast %c1_i32 : i32 to index
    %c0_22 = arith.constant 0 : index
    %c0_23 = arith.constant 0 : index
    %53 = vector.load %arg2[%c0_21, %52, %c0_22, %c0_23] : memref<1x8x8x48xbf16, #tpu.memory_space<vmem>>, vector<1x1x8x48xbf16>
    %54 = vector.shape_cast %53 : vector<1x1x8x48xbf16> to vector<8x48xbf16>
    %55 = arith.extf %54 : vector<8x48xbf16> to vector<8x48xf32>
    %56 = arith.addf %55, %8 : vector<8x48xf32>
    %57 = arith.truncf %47 : vector<8x16xf32> to vector<8x16xbf16>
    %cst_24 = arith.constant dense<0.000000e+00> : vector<8x48xf32>
    %58 = tpu.matmul %57, %4, %cst_24 {dimension_numbers = #tpu.dot_dimension_numbers<[1], [0], [0], [1], [0, 0, 1, 1], [], []>} : vector<8x16xbf16>, vector<16x48xbf16>, vector<8x48xf32> -> vector<8x48xf32>
    %59 = vector.extract_strided_slice %56 {offsets = [0, 0], sizes = [8, 16], strides = [1, 1]} : vector<8x48xf32> to vector<8x16xf32>
    %60 = vector.extract_strided_slice %58 {offsets = [0, 0], sizes = [8, 16], strides = [1, 1]} : vector<8x48xf32> to vector<8x16xf32>
    %61 = arith.addf %59, %60 : vector<8x16xf32>
    %62 = arith.negf %61 : vector<8x16xf32>
    %63 = math.exp %62 : vector<8x16xf32>
    %cst_25 = arith.constant 1.000000e+00 : f32
    %64 = vector.broadcast %cst_25 : f32 to vector<8x16xf32>
    %65 = arith.addf %64, %63 : vector<8x16xf32>
    %66 = arith.divf %64, %65 : vector<8x16xf32>
    %67 = vector.extract_strided_slice %56 {offsets = [0, 16], sizes = [8, 16], strides = [1, 1]} : vector<8x48xf32> to vector<8x16xf32>
    %68 = vector.extract_strided_slice %58 {offsets = [0, 16], sizes = [8, 16], strides = [1, 1]} : vector<8x48xf32> to vector<8x16xf32>
    %69 = arith.addf %67, %68 : vector<8x16xf32>
    %70 = arith.negf %69 : vector<8x16xf32>
    %71 = math.exp %70 : vector<8x16xf32>
    %cst_26 = arith.constant 1.000000e+00 : f32
    %72 = vector.broadcast %cst_26 : f32 to vector<8x16xf32>
    %73 = arith.addf %72, %71 : vector<8x16xf32>
    %74 = arith.divf %72, %73 : vector<8x16xf32>
    %75 = vector.extract_strided_slice %56 {offsets = [0, 32], sizes = [8, 16], strides = [1, 1]} : vector<8x48xf32> to vector<8x16xf32>
    %76 = vector.extract_strided_slice %58 {offsets = [0, 32], sizes = [8, 16], strides = [1, 1]} : vector<8x48xf32> to vector<8x16xf32>
    %77 = arith.addf %76, %12 : vector<8x16xf32>
    %78 = arith.mulf %66, %77 : vector<8x16xf32>
    %79 = arith.addf %75, %78 : vector<8x16xf32>
    %80 = math.tanh %79 : vector<8x16xf32>
    %cst_27 = arith.constant 1.000000e+00 : f32
    %81 = vector.broadcast %cst_27 : f32 to vector<8x16xf32>
    %82 = arith.subf %81, %74 : vector<8x16xf32>
    %83 = arith.mulf %82, %80 : vector<8x16xf32>
    %84 = arith.mulf %74, %47 : vector<8x16xf32>
    %85 = arith.addf %83, %84 : vector<8x16xf32>
    %c0_28 = arith.constant 0 : index
    %86 = arith.index_cast %c1_i32 : i32 to index
    %c0_29 = arith.constant 0 : index
    %c0_30 = arith.constant 0 : index
    %87 = vector.load %arg6[%c0_28, %86, %c0_29, %c0_30] : memref<1x8x8x16xf32, #tpu.memory_space<vmem>>, vector<1x1x8x16xf32>
    %88 = vector.shape_cast %87 : vector<1x1x8x16xf32> to vector<8x16xf32>
    %89 = vector.shape_cast %85 : vector<8x16xf32> to vector<1x1x8x16xf32>
    tpu.vector_store %arg6[%c0_28, %86, %c0_29, %c0_30], %89 {strides = array<i32>} : memref<1x8x8x16xf32, #tpu.memory_space<vmem>>, vector<1x1x8x16xf32>,
    %c2_i32 = arith.constant 2 : i32
    %c0_31 = arith.constant 0 : index
    %90 = arith.index_cast %c2_i32 : i32 to index
    %c0_32 = arith.constant 0 : index
    %c0_33 = arith.constant 0 : index
    %91 = vector.load %arg2[%c0_31, %90, %c0_32, %c0_33] : memref<1x8x8x48xbf16, #tpu.memory_space<vmem>>, vector<1x1x8x48xbf16>
    %92 = vector.shape_cast %91 : vector<1x1x8x48xbf16> to vector<8x48xbf16>
    %93 = arith.extf %92 : vector<8x48xbf16> to vector<8x48xf32>
    %94 = arith.addf %93, %8 : vector<8x48xf32>
    %95 = arith.truncf %85 : vector<8x16xf32> to vector<8x16xbf16>
    %cst_34 = arith.constant dense<0.000000e+00> : vector<8x48xf32>
    %96 = tpu.matmul %95, %4, %cst_34 {dimension_numbers = #tpu.dot_dimension_numbers<[1], [0], [0], [1], [0, 0, 1, 1], [], []>} : vector<8x16xbf16>, vector<16x48xbf16>, vector<8x48xf32> -> vector<8x48xf32>
    %97 = vector.extract_strided_slice %94 {offsets = [0, 0], sizes = [8, 16], strides = [1, 1]} : vector<8x48xf32> to vector<8x16xf32>
    %98 = vector.extract_strided_slice %96 {offsets = [0, 0], sizes = [8, 16], strides = [1, 1]} : vector<8x48xf32> to vector<8x16xf32>
    %99 = arith.addf %97, %98 : vector<8x16xf32>
    %100 = arith.negf %99 : vector<8x16xf32>
    %101 = math.exp %100 : vector<8x16xf32>
    %cst_35 = arith.constant 1.000000e+00 : f32
    %102 = vector.broadcast %cst_35 : f32 to vector<8x16xf32>
    %103 = arith.addf %102, %101 : vector<8x16xf32>
    %104 = arith.divf %102, %103 : vector<8x16xf32>
    %105 = vector.extract_strided_slice %94 {offsets = [0, 16], sizes = [8, 16], strides = [1, 1]} : vector<8x48xf32> to vector<8x16xf32>
    %106 = vector.extract_strided_slice %96 {offsets = [0, 16], sizes = [8, 16], strides = [1, 1]} : vector<8x48xf32> to vector<8x16xf32>
    %107 = arith.addf %105, %106 : vector<8x16xf32>
    %108 = arith.negf %107 : vector<8x16xf32>
    %109 = math.exp %108 : vector<8x16xf32>
    %cst_36 = arith.constant 1.000000e+00 : f32
    %110 = vector.broadcast %cst_36 : f32 to vector<8x16xf32>
    %111 = arith.addf %110, %109 : vector<8x16xf32>
    %112 = arith.divf %110, %111 : vector<8x16xf32>
    %113 = vector.extract_strided_slice %94 {offsets = [0, 32], sizes = [8, 16], strides = [1, 1]} : vector<8x48xf32> to vector<8x16xf32>
    %114 = vector.extract_strided_slice %96 {offsets = [0, 32], sizes = [8, 16], strides = [1, 1]} : vector<8x48xf32> to vector<8x16xf32>
    %115 = arith.addf %114, %12 : vector<8x16xf32>
    %116 = arith.mulf %104, %115 : vector<8x16xf32>
    %117 = arith.addf %113, %116 : vector<8x16xf32>
    %118 = math.tanh %117 : vector<8x16xf32>
    %cst_37 = arith.constant 1.000000e+00 : f32
    %119 = vector.broadcast %cst_37 : f32 to vector<8x16xf32>
    %120 = arith.subf %119, %112 : vector<8x16xf32>
    %121 = arith.mulf %120, %118 : vector<8x16xf32>
    %122 = arith.mulf %112, %85 : vector<8x16xf32>
    %123 = arith.addf %121, %122 : vector<8x16xf32>
    %c0_38 = arith.constant 0 : index
    %124 = arith.index_cast %c2_i32 : i32 to index
    %c0_39 = arith.constant 0 : index
    %c0_40 = arith.constant 0 : index
    %125 = vector.load %arg6[%c0_38, %124, %c0_39, %c0_40] : memref<1x8x8x16xf32, #tpu.memory_space<vmem>>, vector<1x1x8x16xf32>
    %126 = vector.shape_cast %125 : vector<1x1x8x16xf32> to vector<8x16xf32>
    %127 = vector.shape_cast %123 : vector<8x16xf32> to vector<1x1x8x16xf32>
    tpu.vector_store %arg6[%c0_38, %124, %c0_39, %c0_40], %127 {strides = array<i32>} : memref<1x8x8x16xf32, #tpu.memory_space<vmem>>, vector<1x1x8x16xf32>,
    %c3_i32 = arith.constant 3 : i32
    %c0_41 = arith.constant 0 : index
    %128 = arith.index_cast %c3_i32 : i32 to index
    %c0_42 = arith.constant 0 : index
    %c0_43 = arith.constant 0 : index
    %129 = vector.load %arg2[%c0_41, %128, %c0_42, %c0_43] : memref<1x8x8x48xbf16, #tpu.memory_space<vmem>>, vector<1x1x8x48xbf16>
    %130 = vector.shape_cast %129 : vector<1x1x8x48xbf16> to vector<8x48xbf16>
    %131 = arith.extf %130 : vector<8x48xbf16> to vector<8x48xf32>
    %132 = arith.addf %131, %8 : vector<8x48xf32>
    %133 = arith.truncf %123 : vector<8x16xf32> to vector<8x16xbf16>
    %cst_44 = arith.constant dense<0.000000e+00> : vector<8x48xf32>
    %134 = tpu.matmul %133, %4, %cst_44 {dimension_numbers = #tpu.dot_dimension_numbers<[1], [0], [0], [1], [0, 0, 1, 1], [], []>} : vector<8x16xbf16>, vector<16x48xbf16>, vector<8x48xf32> -> vector<8x48xf32>
    %135 = vector.extract_strided_slice %132 {offsets = [0, 0], sizes = [8, 16], strides = [1, 1]} : vector<8x48xf32> to vector<8x16xf32>
    %136 = vector.extract_strided_slice %134 {offsets = [0, 0], sizes = [8, 16], strides = [1, 1]} : vector<8x48xf32> to vector<8x16xf32>
    %137 = arith.addf %135, %136 : vector<8x16xf32>
    %138 = arith.negf %137 : vector<8x16xf32>
    %139 = math.exp %138 : vector<8x16xf32>
    %cst_45 = arith.constant 1.000000e+00 : f32
    %140 = vector.broadcast %cst_45 : f32 to vector<8x16xf32>
    %141 = arith.addf %140, %139 : vector<8x16xf32>
    %142 = arith.divf %140, %141 : vector<8x16xf32>
    %143 = vector.extract_strided_slice %132 {offsets = [0, 16], sizes = [8, 16], strides = [1, 1]} : vector<8x48xf32> to vector<8x16xf32>
    %144 = vector.extract_strided_slice %134 {offsets = [0, 16], sizes = [8, 16], strides = [1, 1]} : vector<8x48xf32> to vector<8x16xf32>
    %145 = arith.addf %143, %144 : vector<8x16xf32>
    %146 = arith.negf %145 : vector<8x16xf32>
    %147 = math.exp %146 : vector<8x16xf32>
    %cst_46 = arith.constant 1.000000e+00 : f32
    %148 = vector.broadcast %cst_46 : f32 to vector<8x16xf32>
    %149 = arith.addf %148, %147 : vector<8x16xf32>
    %150 = arith.divf %148, %149 : vector<8x16xf32>
    %151 = vector.extract_strided_slice %132 {offsets = [0, 32], sizes = [8, 16], strides = [1, 1]} : vector<8x48xf32> to vector<8x16xf32>
    %152 = vector.extract_strided_slice %134 {offsets = [0, 32], sizes = [8, 16], strides = [1, 1]} : vector<8x48xf32> to vector<8x16xf32>
    %153 = arith.addf %152, %12 : vector<8x16xf32>
    %154 = arith.mulf %142, %153 : vector<8x16xf32>
    %155 = arith.addf %151, %154 : vector<8x16xf32>
    %156 = math.tanh %155 : vector<8x16xf32>
    %cst_47 = arith.constant 1.000000e+00 : f32
    %157 = vector.broadcast %cst_47 : f32 to vector<8x16xf32>
    %158 = arith.subf %157, %150 : vector<8x16xf32>
    %159 = arith.mulf %158, %156 : vector<8x16xf32>
    %160 = arith.mulf %150, %123 : vector<8x16xf32>
    %161 = arith.addf %159, %160 : vector<8x16xf32>
    %c0_48 = arith.constant 0 : index
    %162 = arith.index_cast %c3_i32 : i32 to index
    %c0_49 = arith.constant 0 : index
    %c0_50 = arith.constant 0 : index
    %163 = vector.load %arg6[%c0_48, %162, %c0_49, %c0_50] : memref<1x8x8x16xf32, #tpu.memory_space<vmem>>, vector<1x1x8x16xf32>
    %164 = vector.shape_cast %163 : vector<1x1x8x16xf32> to vector<8x16xf32>
    %165 = vector.shape_cast %161 : vector<8x16xf32> to vector<1x1x8x16xf32>
    tpu.vector_store %arg6[%c0_48, %162, %c0_49, %c0_50], %165 {strides = array<i32>} : memref<1x8x8x16xf32, #tpu.memory_space<vmem>>, vector<1x1x8x16xf32>,
    %c4_i32 = arith.constant 4 : i32
    %c0_51 = arith.constant 0 : index
    %166 = arith.index_cast %c4_i32 : i32 to index
    %c0_52 = arith.constant 0 : index
    %c0_53 = arith.constant 0 : index
    %167 = vector.load %arg2[%c0_51, %166, %c0_52, %c0_53] : memref<1x8x8x48xbf16, #tpu.memory_space<vmem>>, vector<1x1x8x48xbf16>
    %168 = vector.shape_cast %167 : vector<1x1x8x48xbf16> to vector<8x48xbf16>
    %169 = arith.extf %168 : vector<8x48xbf16> to vector<8x48xf32>
    %170 = arith.addf %169, %8 : vector<8x48xf32>
    %171 = arith.truncf %161 : vector<8x16xf32> to vector<8x16xbf16>
    %cst_54 = arith.constant dense<0.000000e+00> : vector<8x48xf32>
    %172 = tpu.matmul %171, %4, %cst_54 {dimension_numbers = #tpu.dot_dimension_numbers<[1], [0], [0], [1], [0, 0, 1, 1], [], []>} : vector<8x16xbf16>, vector<16x48xbf16>, vector<8x48xf32> -> vector<8x48xf32>
    %173 = vector.extract_strided_slice %170 {offsets = [0, 0], sizes = [8, 16], strides = [1, 1]} : vector<8x48xf32> to vector<8x16xf32>
    %174 = vector.extract_strided_slice %172 {offsets = [0, 0], sizes = [8, 16], strides = [1, 1]} : vector<8x48xf32> to vector<8x16xf32>
    %175 = arith.addf %173, %174 : vector<8x16xf32>
    %176 = arith.negf %175 : vector<8x16xf32>
    %177 = math.exp %176 : vector<8x16xf32>
    %cst_55 = arith.constant 1.000000e+00 : f32
    %178 = vector.broadcast %cst_55 : f32 to vector<8x16xf32>
    %179 = arith.addf %178, %177 : vector<8x16xf32>
    %180 = arith.divf %178, %179 : vector<8x16xf32>
    %181 = vector.extract_strided_slice %170 {offsets = [0, 16], sizes = [8, 16], strides = [1, 1]} : vector<8x48xf32> to vector<8x16xf32>
    %182 = vector.extract_strided_slice %172 {offsets = [0, 16], sizes = [8, 16], strides = [1, 1]} : vector<8x48xf32> to vector<8x16xf32>
    %183 = arith.addf %181, %182 : vector<8x16xf32>
    %184 = arith.negf %183 : vector<8x16xf32>
    %185 = math.exp %184 : vector<8x16xf32>
    %cst_56 = arith.constant 1.000000e+00 : f32
    %186 = vector.broadcast %cst_56 : f32 to vector<8x16xf32>
    %187 = arith.addf %186, %185 : vector<8x16xf32>
    %188 = arith.divf %186, %187 : vector<8x16xf32>
    %189 = vector.extract_strided_slice %170 {offsets = [0, 32], sizes = [8, 16], strides = [1, 1]} : vector<8x48xf32> to vector<8x16xf32>
    %190 = vector.extract_strided_slice %172 {offsets = [0, 32], sizes = [8, 16], strides = [1, 1]} : vector<8x48xf32> to vector<8x16xf32>
    %191 = arith.addf %190, %12 : vector<8x16xf32>
    %192 = arith.mulf %180, %191 : vector<8x16xf32>
    %193 = arith.addf %189, %192 : vector<8x16xf32>
    %194 = math.tanh %193 : vector<8x16xf32>
    %cst_57 = arith.constant 1.000000e+00 : f32
    %195 = vector.broadcast %cst_57 : f32 to vector<8x16xf32>
    %196 = arith.subf %195, %188 : vector<8x16xf32>
    %197 = arith.mulf %196, %194 : vector<8x16xf32>
    %198 = arith.mulf %188, %161 : vector<8x16xf32>
    %199 = arith.addf %197, %198 : vector<8x16xf32>
    %c0_58 = arith.constant 0 : index
    %200 = arith.index_cast %c4_i32 : i32 to index
    %c0_59 = arith.constant 0 : index
    %c0_60 = arith.constant 0 : index
    %201 = vector.load %arg6[%c0_58, %200, %c0_59, %c0_60] : memref<1x8x8x16xf32, #tpu.memory_space<vmem>>, vector<1x1x8x16xf32>
    %202 = vector.shape_cast %201 : vector<1x1x8x16xf32> to vector<8x16xf32>
    %203 = vector.shape_cast %199 : vector<8x16xf32> to vector<1x1x8x16xf32>
    tpu.vector_store %arg6[%c0_58, %200, %c0_59, %c0_60], %203 {strides = array<i32>} : memref<1x8x8x16xf32, #tpu.memory_space<vmem>>, vector<1x1x8x16xf32>,
    %c5_i32 = arith.constant 5 : i32
    %c0_61 = arith.constant 0 : index
    %204 = arith.index_cast %c5_i32 : i32 to index
    %c0_62 = arith.constant 0 : index
    %c0_63 = arith.constant 0 : index
    %205 = vector.load %arg2[%c0_61, %204, %c0_62, %c0_63] : memref<1x8x8x48xbf16, #tpu.memory_space<vmem>>, vector<1x1x8x48xbf16>
    %206 = vector.shape_cast %205 : vector<1x1x8x48xbf16> to vector<8x48xbf16>
    %207 = arith.extf %206 : vector<8x48xbf16> to vector<8x48xf32>
    %208 = arith.addf %207, %8 : vector<8x48xf32>
    %209 = arith.truncf %199 : vector<8x16xf32> to vector<8x16xbf16>
    %cst_64 = arith.constant dense<0.000000e+00> : vector<8x48xf32>
    %210 = tpu.matmul %209, %4, %cst_64 {dimension_numbers = #tpu.dot_dimension_numbers<[1], [0], [0], [1], [0, 0, 1, 1], [], []>} : vector<8x16xbf16>, vector<16x48xbf16>, vector<8x48xf32> -> vector<8x48xf32>
    %211 = vector.extract_strided_slice %208 {offsets = [0, 0], sizes = [8, 16], strides = [1, 1]} : vector<8x48xf32> to vector<8x16xf32>
    %212 = vector.extract_strided_slice %210 {offsets = [0, 0], sizes = [8, 16], strides = [1, 1]} : vector<8x48xf32> to vector<8x16xf32>
    %213 = arith.addf %211, %212 : vector<8x16xf32>
    %214 = arith.negf %213 : vector<8x16xf32>
    %215 = math.exp %214 : vector<8x16xf32>
    %cst_65 = arith.constant 1.000000e+00 : f32
    %216 = vector.broadcast %cst_65 : f32 to vector<8x16xf32>
    %217 = arith.addf %216, %215 : vector<8x16xf32>
    %218 = arith.divf %216, %217 : vector<8x16xf32>
    %219 = vector.extract_strided_slice %208 {offsets = [0, 16], sizes = [8, 16], strides = [1, 1]} : vector<8x48xf32> to vector<8x16xf32>
    %220 = vector.extract_strided_slice %210 {offsets = [0, 16], sizes = [8, 16], strides = [1, 1]} : vector<8x48xf32> to vector<8x16xf32>
    %221 = arith.addf %219, %220 : vector<8x16xf32>
    %222 = arith.negf %221 : vector<8x16xf32>
    %223 = math.exp %222 : vector<8x16xf32>
    %cst_66 = arith.constant 1.000000e+00 : f32
    %224 = vector.broadcast %cst_66 : f32 to vector<8x16xf32>
    %225 = arith.addf %224, %223 : vector<8x16xf32>
    %226 = arith.divf %224, %225 : vector<8x16xf32>
    %227 = vector.extract_strided_slice %208 {offsets = [0, 32], sizes = [8, 16], strides = [1, 1]} : vector<8x48xf32> to vector<8x16xf32>
    %228 = vector.extract_strided_slice %210 {offsets = [0, 32], sizes = [8, 16], strides = [1, 1]} : vector<8x48xf32> to vector<8x16xf32>
    %229 = arith.addf %228, %12 : vector<8x16xf32>
    %230 = arith.mulf %218, %229 : vector<8x16xf32>
    %231 = arith.addf %227, %230 : vector<8x16xf32>
    %232 = math.tanh %231 : vector<8x16xf32>
    %cst_67 = arith.constant 1.000000e+00 : f32
    %233 = vector.broadcast %cst_67 : f32 to vector<8x16xf32>
    %234 = arith.subf %233, %226 : vector<8x16xf32>
    %235 = arith.mulf %234, %232 : vector<8x16xf32>
    %236 = arith.mulf %226, %199 : vector<8x16xf32>
    %237 = arith.addf %235, %236 : vector<8x16xf32>
    %c0_68 = arith.constant 0 : index
    %238 = arith.index_cast %c5_i32 : i32 to index
    %c0_69 = arith.constant 0 : index
    %c0_70 = arith.constant 0 : index
    %239 = vector.load %arg6[%c0_68, %238, %c0_69, %c0_70] : memref<1x8x8x16xf32, #tpu.memory_space<vmem>>, vector<1x1x8x16xf32>
    %240 = vector.shape_cast %239 : vector<1x1x8x16xf32> to vector<8x16xf32>
    %241 = vector.shape_cast %237 : vector<8x16xf32> to vector<1x1x8x16xf32>
    tpu.vector_store %arg6[%c0_68, %238, %c0_69, %c0_70], %241 {strides = array<i32>} : memref<1x8x8x16xf32, #tpu.memory_space<vmem>>, vector<1x1x8x16xf32>,
    %c6_i32 = arith.constant 6 : i32
    %c0_71 = arith.constant 0 : index
    %242 = arith.index_cast %c6_i32 : i32 to index
    %c0_72 = arith.constant 0 : index
    %c0_73 = arith.constant 0 : index
    %243 = vector.load %arg2[%c0_71, %242, %c0_72, %c0_73] : memref<1x8x8x48xbf16, #tpu.memory_space<vmem>>, vector<1x1x8x48xbf16>
    %244 = vector.shape_cast %243 : vector<1x1x8x48xbf16> to vector<8x48xbf16>
    %245 = arith.extf %244 : vector<8x48xbf16> to vector<8x48xf32>
    %246 = arith.addf %245, %8 : vector<8x48xf32>
    %247 = arith.truncf %237 : vector<8x16xf32> to vector<8x16xbf16>
    %cst_74 = arith.constant dense<0.000000e+00> : vector<8x48xf32>
    %248 = tpu.matmul %247, %4, %cst_74 {dimension_numbers = #tpu.dot_dimension_numbers<[1], [0], [0], [1], [0, 0, 1, 1], [], []>} : vector<8x16xbf16>, vector<16x48xbf16>, vector<8x48xf32> -> vector<8x48xf32>
    %249 = vector.extract_strided_slice %246 {offsets = [0, 0], sizes = [8, 16], strides = [1, 1]} : vector<8x48xf32> to vector<8x16xf32>
    %250 = vector.extract_strided_slice %248 {offsets = [0, 0], sizes = [8, 16], strides = [1, 1]} : vector<8x48xf32> to vector<8x16xf32>
    %251 = arith.addf %249, %250 : vector<8x16xf32>
    %252 = arith.negf %251 : vector<8x16xf32>
    %253 = math.exp %252 : vector<8x16xf32>
    %cst_75 = arith.constant 1.000000e+00 : f32
    %254 = vector.broadcast %cst_75 : f32 to vector<8x16xf32>
    %255 = arith.addf %254, %253 : vector<8x16xf32>
    %256 = arith.divf %254, %255 : vector<8x16xf32>
    %257 = vector.extract_strided_slice %246 {offsets = [0, 16], sizes = [8, 16], strides = [1, 1]} : vector<8x48xf32> to vector<8x16xf32>
    %258 = vector.extract_strided_slice %248 {offsets = [0, 16], sizes = [8, 16], strides = [1, 1]} : vector<8x48xf32> to vector<8x16xf32>
    %259 = arith.addf %257, %258 : vector<8x16xf32>
    %260 = arith.negf %259 : vector<8x16xf32>
    %261 = math.exp %260 : vector<8x16xf32>
    %cst_76 = arith.constant 1.000000e+00 : f32
    %262 = vector.broadcast %cst_76 : f32 to vector<8x16xf32>
    %263 = arith.addf %262, %261 : vector<8x16xf32>
    %264 = arith.divf %262, %263 : vector<8x16xf32>
    %265 = vector.extract_strided_slice %246 {offsets = [0, 32], sizes = [8, 16], strides = [1, 1]} : vector<8x48xf32> to vector<8x16xf32>
    %266 = vector.extract_strided_slice %248 {offsets = [0, 32], sizes = [8, 16], strides = [1, 1]} : vector<8x48xf32> to vector<8x16xf32>
    %267 = arith.addf %266, %12 : vector<8x16xf32>
    %268 = arith.mulf %256, %267 : vector<8x16xf32>
    %269 = arith.addf %265, %268 : vector<8x16xf32>
    %270 = math.tanh %269 : vector<8x16xf32>
    %cst_77 = arith.constant 1.000000e+00 : f32
    %271 = vector.broadcast %cst_77 : f32 to vector<8x16xf32>
    %272 = arith.subf %271, %264 : vector<8x16xf32>
    %273 = arith.mulf %272, %270 : vector<8x16xf32>
    %274 = arith.mulf %264, %237 : vector<8x16xf32>
    %275 = arith.addf %273, %274 : vector<8x16xf32>
    %c0_78 = arith.constant 0 : index
    %276 = arith.index_cast %c6_i32 : i32 to index
    %c0_79 = arith.constant 0 : index
    %c0_80 = arith.constant 0 : index
    %277 = vector.load %arg6[%c0_78, %276, %c0_79, %c0_80] : memref<1x8x8x16xf32, #tpu.memory_space<vmem>>, vector<1x1x8x16xf32>
    %278 = vector.shape_cast %277 : vector<1x1x8x16xf32> to vector<8x16xf32>
    %279 = vector.shape_cast %275 : vector<8x16xf32> to vector<1x1x8x16xf32>
    tpu.vector_store %arg6[%c0_78, %276, %c0_79, %c0_80], %279 {strides = array<i32>} : memref<1x8x8x16xf32, #tpu.memory_space<vmem>>, vector<1x1x8x16xf32>,
    %c7_i32 = arith.constant 7 : i32
    %c0_81 = arith.constant 0 : index
    %280 = arith.index_cast %c7_i32 : i32 to index
    %c0_82 = arith.constant 0 : index
    %c0_83 = arith.constant 0 : index
    %281 = vector.load %arg2[%c0_81, %280, %c0_82, %c0_83] : memref<1x8x8x48xbf16, #tpu.memory_space<vmem>>, vector<1x1x8x48xbf16>
    %282 = vector.shape_cast %281 : vector<1x1x8x48xbf16> to vector<8x48xbf16>
    %283 = arith.extf %282 : vector<8x48xbf16> to vector<8x48xf32>
    %284 = arith.addf %283, %8 : vector<8x48xf32>
    %285 = arith.truncf %275 : vector<8x16xf32> to vector<8x16xbf16>
    %cst_84 = arith.constant dense<0.000000e+00> : vector<8x48xf32>
    %286 = tpu.matmul %285, %4, %cst_84 {dimension_numbers = #tpu.dot_dimension_numbers<[1], [0], [0], [1], [0, 0, 1, 1], [], []>} : vector<8x16xbf16>, vector<16x48xbf16>, vector<8x48xf32> -> vector<8x48xf32>
    %287 = vector.extract_strided_slice %284 {offsets = [0, 0], sizes = [8, 16], strides = [1, 1]} : vector<8x48xf32> to vector<8x16xf32>
    %288 = vector.extract_strided_slice %286 {offsets = [0, 0], sizes = [8, 16], strides = [1, 1]} : vector<8x48xf32> to vector<8x16xf32>
    %289 = arith.addf %287, %288 : vector<8x16xf32>
    %290 = arith.negf %289 : vector<8x16xf32>
    %291 = math.exp %290 : vector<8x16xf32>
    %cst_85 = arith.constant 1.000000e+00 : f32
    %292 = vector.broadcast %cst_85 : f32 to vector<8x16xf32>
    %293 = arith.addf %292, %291 : vector<8x16xf32>
    %294 = arith.divf %292, %293 : vector<8x16xf32>
    %295 = vector.extract_strided_slice %284 {offsets = [0, 16], sizes = [8, 16], strides = [1, 1]} : vector<8x48xf32> to vector<8x16xf32>
    %296 = vector.extract_strided_slice %286 {offsets = [0, 16], sizes = [8, 16], strides = [1, 1]} : vector<8x48xf32> to vector<8x16xf32>
    %297 = arith.addf %295, %296 : vector<8x16xf32>
    %298 = arith.negf %297 : vector<8x16xf32>
    %299 = math.exp %298 : vector<8x16xf32>
    %cst_86 = arith.constant 1.000000e+00 : f32
    %300 = vector.broadcast %cst_86 : f32 to vector<8x16xf32>
    %301 = arith.addf %300, %299 : vector<8x16xf32>
    %302 = arith.divf %300, %301 : vector<8x16xf32>
    %303 = vector.extract_strided_slice %284 {offsets = [0, 32], sizes = [8, 16], strides = [1, 1]} : vector<8x48xf32> to vector<8x16xf32>
    %304 = vector.extract_strided_slice %286 {offsets = [0, 32], sizes = [8, 16], strides = [1, 1]} : vector<8x48xf32> to vector<8x16xf32>
    %305 = arith.addf %304, %12 : vector<8x16xf32>
    %306 = arith.mulf %294, %305 : vector<8x16xf32>
    %307 = arith.addf %303, %306 : vector<8x16xf32>
    %308 = math.tanh %307 : vector<8x16xf32>
    %cst_87 = arith.constant 1.000000e+00 : f32
    %309 = vector.broadcast %cst_87 : f32 to vector<8x16xf32>
    %310 = arith.subf %309, %302 : vector<8x16xf32>
    %311 = arith.mulf %310, %308 : vector<8x16xf32>
    %312 = arith.mulf %302, %275 : vector<8x16xf32>
    %313 = arith.addf %311, %312 : vector<8x16xf32>
    %c0_88 = arith.constant 0 : index
    %314 = arith.index_cast %c7_i32 : i32 to index
    %c0_89 = arith.constant 0 : index
    %c0_90 = arith.constant 0 : index
    %315 = vector.load %arg6[%c0_88, %314, %c0_89, %c0_90] : memref<1x8x8x16xf32, #tpu.memory_space<vmem>>, vector<1x1x8x16xf32>
    %316 = vector.shape_cast %315 : vector<1x1x8x16xf32> to vector<8x16xf32>
    %317 = vector.shape_cast %313 : vector<8x16xf32> to vector<1x1x8x16xf32>
    tpu.vector_store %arg6[%c0_88, %314, %c0_89, %c0_90], %317 {strides = array<i32>} : memref<1x8x8x16xf32, #tpu.memory_space<vmem>>, vector<1x1x8x16xf32>,
    %c8_i32 = arith.constant 8 : i32
    %c0_91 = arith.constant 0 : index
    %c0_92 = arith.constant 0 : index
    %318 = vector.load %arg8[%c0_91, %c0_92] : memref<8x16xf32, #tpu.memory_space<vmem>>, vector<8x16xf32>
    tpu.vector_store %arg8[%c0_91, %c0_92], %313 {strides = array<i32>} : memref<8x16xf32, #tpu.memory_space<vmem>>, vector<8x16xf32>,
    %c0_i32_93 = arith.constant 0 : i32
    %319 = arith.cmpi eq, %arg1, %c0_i32_93 : i32
    %320 = arith.extui %319 : i1 to i32
    %c0_i32_94 = arith.constant 0 : i32
    %321 = arith.cmpi ne, %320, %c0_i32_94 : i32
    scf.if %321 {
      %c0_95 = arith.constant 0 : index
      %c0_96 = arith.constant 0 : index
      %c0_97 = arith.constant 0 : index
      %322 = vector.load %arg7[%c0_95, %c0_96, %c0_97] : memref<1x8x16xf32, #tpu.memory_space<vmem>>, vector<1x8x16xf32>
      %323 = vector.shape_cast %322 : vector<1x8x16xf32> to vector<8x16xf32>
      %324 = vector.shape_cast %313 : vector<8x16xf32> to vector<1x8x16xf32>
      tpu.vector_store %arg7[%c0_95, %c0_96, %c0_97], %324 {strides = array<i32>} : memref<1x8x16xf32, #tpu.memory_space<vmem>>, vector<1x8x16xf32>,
    } else {
    }
    return
  }
  func.func @transform_0(%arg0: i32, %arg1: i32) -> (i32, i32, i32, i32) {
    %c0_i32 = arith.constant 0 : i32
    %c0_i32_0 = arith.constant 0 : i32
    %c0_i32_1 = arith.constant 0 : i32
    return %arg0, %arg1, %c0_i32, %c0_i32_0 : i32, i32, i32, i32
  }
  func.func @transform_1(%arg0: i32, %arg1: i32) -> (i32, i32, i32) {
    %c0_i32 = arith.constant 0 : i32
    %c0_i32_0 = arith.constant 0 : i32
    %c0_i32_1 = arith.constant 0 : i32
    return %arg0, %c0_i32, %c0_i32_0 : i32, i32, i32
  }
  func.func @transform_2(%arg0: i32, %arg1: i32) -> (i32, i32, i32) {
    %c0_i32 = arith.constant 0 : i32
    %c0_i32_0 = arith.constant 0 : i32
    %c0_i32_1 = arith.constant 0 : i32
    return %arg0, %c0_i32, %c0_i32_0 : i32, i32, i32
  }
  func.func @transform_3(%arg0: i32, %arg1: i32) -> (i32, i32, i32) {
    %c0_i32 = arith.constant 0 : i32
    %c0_i32_0 = arith.constant 0 : i32
    %c0_i32_1 = arith.constant 0 : i32
    return %arg0, %c0_i32, %c0_i32_0 : i32, i32, i32
  }
  func.func @transform_4(%arg0: i32, %arg1: i32) -> (i32, i32, i32, i32) {
    %c0_i32 = arith.constant 0 : i32
    %c0_i32_0 = arith.constant 0 : i32
    %c0_i32_1 = arith.constant 0 : i32
    return %arg0, %arg1, %c0_i32, %c0_i32_0 : i32, i32, i32, i32
  }
  func.func @transform_5(%arg0: i32, %arg1: i32) -> (i32, i32, i32) {
    %c0_i32 = arith.constant 0 : i32
    %c0_i32_0 = arith.constant 0 : i32
    %c0_i32_1 = arith.constant 0 : i32
    return %arg0, %c0_i32, %c0_i32_0 : i32, i32, i32
  }
}

</mosaic_0001>

<bundles_post_ra>
// kernel: encoder_forward.1
= control target key start
LH: loop header
LB: loop body
LE: loop exit
PB: predicated region body
PF: predicated region fallthrough
CT: control target
= control target key end

     0   :  { %s1252_s18 = smov 0   ;;  %s1254_s19 = smov 0   ;;  %s1439_s0 = inlined_call_operand.vmem [shape: bf16[2,8,8,48], index: 0, kind: input, shape index: {}]   ;;  %s1440_s1 = inlined_call_operand.vmem [shape: bf16[2,16,48], index: 1, kind: input, shape index: {}]   ;;  %s1441_s2 = inlined_call_operand.vmem [shape: f32[2,1,48], index: 2, kind: input, shape index: {}]   ;;  %s1442_s3 = inlined_call_operand.vmem [shape: f32[2,1,16], index: 3, kind: input, shape index: {}]   ;;  %s1443_s4 = inlined_call_operand.vmem [shape: f32[2,8,8,16], index: 4, kind: output, shape index: {0}]   ;;  %s1444_s5 = inlined_call_operand.vmem [shape: f32[2,8,16], index: 5, kind: output, shape index: {1}]  }
   0x1   :  { %s1256_s20 = smov 0  }
   0x2 LB: > { %s28_s21 = sadd.s32 1, %s1211_s19  ;;  %p1066_p0 = scmp.ge.s32.totalorder %s1215_s20, 1  ;;  %s1215_s20 = sphi %s1256_s20, %s16_s20   ;;  %s1211_s19 = sphi %s1254_s19, %s1446_s19   ;;  %s1207_s18 = sphi %s1252_s18, %s1445_s18  }
   0x3   : > { %p30_p1 = scmp.ge.s32.totalorder %s28_s21, 2  ;;  %p237_p2 = scmp.lt.s32.totalorder %s1215_s20, 3 }
   0x5   : > { %s1448_s21 = smov (%p30_p1, %s28_s21), 0  ;;  %p238_p3 = pnand %p1066_p0, %p237_p2 }
   0x6   : > { %p289_p4 = scmp.lt.s32.totalorder (!%p238_p3), %s1207_s18, 1  ;;  %s1218_s7 = smov (!%p238_p3), 32  }
   0x7   : > { %241 = sbr.rel (%p238_p3) target bundleno = 4648 (0x1228), region = 36  ;;  %s1219_s8 = smov (!%p238_p3), 16  }
   0x8   : > { %s1220_s9 = smov (!%p238_p3), 96   ;;  %s1221_s14 = smov (!%p238_p3), 112  }
   0xc   : > { %vm328_vm0 = vcmask 130048   ;;  %v1217_v0 = vmov 0.0   ;;  %s1450_s18 = smov (!%p289_p4, %s1207_s18), 1 }
   0xd   : > { %329 = vst.msk [vmem:[#allocation2] sm:$0xff] %vm328_vm0, %v1217_v0  ;;  %s1111_s22 = sshll.u32 %s1450_s18, 3  ;;  %s308_s25 = scalar_lea.vmem %s1442_s3, %s1450_s18 }
   0xe   : > { %s302_s28 = scalar_lea.vmem %s1440_s1, %s1111_s22  ;;  %v1143_v1 = vld [vmem:[%s308_s25] ss:$0 sm:$0xff]  ;;  %s305_s6 = scalar_lea.vmem %s1441_s2, %s1450_s18 }
   0xf   : > { %v1113_v2 = vld [vmem:[%s302_s28] sm:$0xff]  ;;  %387 = vrot.lane.b32.xlu0 %v1143_v1, %s1218_s7  ;;  %s1110_s10 = sshll.u32 %s1450_s18, 5  ;;  %s1112_s15 = sshll.u32 %s1450_s18, 6 }
  0x10   : > { %361 = vmatpush.bf16.msra.mxu0 %v1113_v2  ;;  %437 = vmatpush.bf16.msra.mxu1 %v1113_v2  ;;  %s1297_s13 = scalar_lea.vmem %s1439_s0, %s1110_s10  ;;  %v1300_v10 = vld [vmem:[%s305_s6] ss:$0 sm:$0xff]  ;;  %s1395_s23 = scalar_lea.vmem %s1443_s4, %s1112_s15 }
  0x11   : > { %507 = vmatpush.bf16.msra.mxu2 %v1113_v2  ;;  %577 = vmatpush.bf16.msra.mxu3 %v1113_v2  ;;  %v340_v9 = vld [vmem:[%s1297_s13] sm:$0xff]   ;;  %s322_s26 = scalar_lea.vmem %s1444_s5, %s1111_s22 }
  0x12   : > { %v341_v11 = vunpack.c.l.bf16 %v340_v9  ;;  %v421_v43 = vunpack.c.h.bf16 %v340_v9 }
  0x14   : > { %v339_v3 = vld [vmem:[#allocation2] sm:$0xff]  ;;  %647 = vmatpush.bf16.msrb.mxu0 %v1113_v2  ;;  %717 = vmatpush.bf16.msrb.mxu1 %v1113_v2  ;;  %v342_v12 = vadd.f32 %v1300_v10, %v341_v11  ;;  %v422_v44 = vadd.f32 %v1300_v10, %v421_v43 }
  0x15   : > { %v343_v4 = vpack.c.bf16 %v339_v3, %v339_v3  ;;  %409 = vrot.lane.b32.xlu2 %v339_v3, %s1219_s8  ;;  %787 = vmatpush.bf16.msrb.mxu2 %v1113_v2 }
  0x16   : > { %857 = vmatpush.bf16.msrb.mxu3 %v1113_v2 }
  0x17   : > { %1078 = vmatmul.msk.bf16.vlgmr.msra.gmra.mxu0 %vm328_vm0, %v343_v4 }
  0x6f   : > { %v410_v32 = vpop.permute.xlu2 %409 }
  0x81   : > { %v1289_v5 = vpop.permute.xlu0 %387 }
  0x94   : > { %v363_v6 = vpop.f32.mrf.mxu0 }
  0x95   : > { %v390_v7 = vadd.f32 %v1289_v5, %v363_v6  ;;  %v367_v13 = vadd.f32 %v363_v6, %v342_v12 }
  0x97   : > { %392 = vrot.lane.b32.xlu0 %v390_v7, %s1220_s9  ;;  %v1079_v14 = vmul.f32 -1.442695, %v367_v13 }
  0x99   : > { %1145 = vpow2.f32 %v1079_v14 }
  0x9c   : > { %v365_v8 = vpop.f32.mrf.mxu0 }
  0x9f   : > { %v1146_v15 = vpop.eup %1145 }
  0xa0   : > { %v371_v16 = vadd.f32 1.0, %v1146_v15 }
  0xa2   : > { %1147 = vrcp.f32 %v371_v16  ;;  %v383_v22 = vand.u32 2147483648, %v371_v16  ;;  %vm377_vm2 = vweird.f32 %v371_v16  ;;  %v381_v23 = vand.u32 2147483647, %v371_v16 }
  0xa4   : > { %v384_v25 = vor.u32 1.1754944e-38, %v383_v22  ;;  %vm382_vm4 = vcmp.eq.f32.partialorder %v381_v23, 8.507059e+37 }
  0xa8   : > { %v1148_v17 = vpop.eup %1147 }
  0xa9   : > { %v373_v18 = vmul.f32 %v1148_v17, %v371_v16  ;;  %vm378_vm1 = vweird.f32 %v1148_v17 }
  0xaa   : > { %vm379_vm3 = vmor %vm377_vm2, %vm378_vm1 }
  0xab   : > { %v374_v19 = vsub.f32 1.0, %v373_v18 }
  0xad   : > { %v375_v20 = vmul.f32 %v1148_v17, %v374_v19 }
  0xaf   : > { %v376_v21 = vadd.f32 %v1148_v17, %v375_v20 }
  0xb1   : > { %v380_v24 = vsel %vm379_vm3, %v1148_v17, %v376_v21 }
  0xb2   : > { %v385_v26 = vsel %vm382_vm4, %v384_v25, %v380_v24 }
  0xb3   : > { %v402_v33 = vsub.f32 1.0, %v385_v26  ;;  %v412_v35 = vmul.f32 %v410_v32, %v385_v26 }
 0x109   : > { %v393_v27 = vpop.permute.xlu0 %392 }
 0x10a   : > { %v395_v28 = vmul.f32 %v393_v27, %v385_v26 }
 0x10c   : > { %397 = vrot.lane.b32.xlu1 %v395_v28, %s1218_s7 }
 0x17e   : > { %v398_v29 = vpop.permute.xlu1 %397 }
 0x17f   : > { %v400_v30 = vadd.f32 %v398_v29, %v342_v12  ;;  %v1084_v12 = vld [vmem:[%s1297_s13 + $0x8] sm:$0xff]  }
 0x180   : > { %v491_v13 = vunpack.c.l.bf16 %v1084_v12 }
 0x181   : > { %1149 = vtanh.f32 %v400_v30 }
 0x182   : > { %v492_v14 = vadd.f32 %v1300_v10, %v491_v13 }
 0x187   : > { %v1150_v31 = vpop.eup %1149 }
 0x188   : > { %404 = vrot.lane.b32.xlu1 %v1150_v31, %s1221_s14 }
 0x1fa   : > { %v405_v34 = vpop.permute.xlu1 %404 }
 0x1fb   : > { %v407_v36 = vmul.f32 %v405_v34, %v402_v33 }
 0x1fd   : > { %v1305_v37 = vadd.f32 %v412_v35, %v407_v36 }
 0x1ff   : > { %v423_v38 = vpack.c.bf16 %v1305_v37, %v1305_v37 }
 0x201   : > { %425 = vrot.lane.b32.xlu2 %v423_v38, %s1221_s14 }
 0x25b   : > { %v426_v39 = vpop.permute.xlu2 %425 }
 0x25c   : > { %1081 = vmatmul.msk.bf16.vlgmr.msra.gmra.mxu1 %vm328_vm0, %v426_v39 }
 0x2d9   : > { %v439_v40 = vpop.f32.mrf.mxu1 }
 0x2da   : > { %v463_v41 = vadd.f32 %v439_v40, %v1289_v5  ;;  %v443_v45 = vadd.f32 %v439_v40, %v422_v44 }
 0x2dc   : > { %465 = vrot.lane.b32.xlu0 %v463_v41, %s1220_s9  ;;  %v1082_v46 = vmul.f32 -1.442695, %v443_v45  ;;  %v561_v45 = vunpack.c.h.bf16 %v1084_v12 }
 0x2de   : > { %1151 = vpow2.f32 %v1082_v46  ;;  %v562_v46 = vadd.f32 %v1300_v10, %v561_v45 }
 0x2e1   : > { %v441_v42 = vpop.f32.mrf.mxu1 }
 0x2e4   : > { %v1152_v47 = vpop.eup %1151 }
 0x2e5   : > { %v447_v48 = vadd.f32 1.0, %v1152_v47 }
 0x2e7   : > { %1153 = vrcp.f32 %v447_v48  ;;  %v459_v54 = vand.u32 2147483648, %v447_v48  ;;  %vm453_vm6 = vweird.f32 %v447_v48  ;;  %v457_v55 = vand.u32 2147483647, %v447_v48 }
 0x2e9   : > { %v460_v57 = vor.u32 1.1754944e-38, %v459_v54  ;;  %vm458_vm8 = vcmp.eq.f32.partialorder %v457_v55, 8.507059e+37 }
 0x2ed   : > { %v1154_v49 = vpop.eup %1153 }
 0x2ee   : > { %v449_v50 = vmul.f32 %v1154_v49, %v447_v48  ;;  %vm454_vm5 = vweird.f32 %v1154_v49 }
 0x2ef   : > { %vm455_vm7 = vmor %vm453_vm6, %vm454_vm5 }
 0x2f0   : > { %v450_v51 = vsub.f32 1.0, %v449_v50 }
 0x2f2   : > { %v451_v52 = vmul.f32 %v1154_v49, %v450_v51 }
 0x2f4   : > { %v452_v53 = vadd.f32 %v1154_v49, %v451_v52 }
 0x2f6   : > { %v456_v56 = vsel %vm455_vm7, %v1154_v49, %v452_v53 }
 0x2f7   : > { %v461_v59 = vsel %vm458_vm8, %v460_v57, %v456_v56 }
 0x2f8   : > { %v475_v0 = vsub.f32 1.0, %v461_v59  ;;  %v481_v2 = vmul.f32 %v461_v59, %v1305_v37 }
 0x34e   : > { %v466_v58 = vpop.permute.xlu0 %465 }
 0x34f   : > { %v468_v60 = vmul.f32 %v466_v58, %v461_v59 }
 0x351   : > { %470 = vrot.lane.b32.xlu1 %v468_v60, %s1218_s7 }
 0x3c3   : > { %v471_v61 = vpop.permute.xlu1 %470 }
 0x3c4   : > { %v473_v62 = vadd.f32 %v471_v61, %v422_v44 }
 0x3c6   : > { %1155 = vtanh.f32 %v473_v62 }
 0x3cc   : > { %v1156_v63 = vpop.eup %1155 }
 0x3cd   : > { %477 = vrot.lane.b32.xlu2 %v1156_v63, %s1221_s14 }
 0x427   : > { %v478_v1 = vpop.permute.xlu2 %477 }
 0x428   : > { %v480_v3 = vmul.f32 %v478_v1, %v475_v0 }
 0x42a   : > { %v1317_v4 = vadd.f32 %v481_v2, %v480_v3 }
 0x42c   : > { %v493_v6 = vpack.c.bf16 %v1317_v4, %v1317_v4 }
 0x42e   : > { %495 = vrot.lane.b32.xlu0 %v493_v6, %s1221_s14 }
 0x4a0   : > { %v496_v7 = vpop.permute.xlu0 %495 }
 0x4a1   : > { %1085 = vmatmul.msk.bf16.vlgmr.msra.gmra.mxu2 %vm328_vm0, %v496_v7 }
 0x524   : > { %v509_v8 = vpop.f32.mrf.mxu2 }
 0x525   : > { %v533_v9 = vadd.f32 %v509_v8, %v1289_v5  ;;  %v513_v15 = vadd.f32 %v509_v8, %v492_v14 }
 0x527   : > { %535 = vrot.lane.b32.xlu1 %v533_v9, %s1220_s9  ;;  %v1086_v16 = vmul.f32 -1.442695, %v513_v15  ;;  %v1092_v15 = vld [vmem:[%s1297_s13 + $0x10] sm:$0xff]  }
 0x529   : > { %1157 = vpow2.f32 %v1086_v16  ;;  %v631_v16 = vunpack.c.l.bf16 %v1092_v15 }
 0x52c   : > { %v511_v11 = vpop.f32.mrf.mxu2 }
 0x52f   : > { %v1158_v17 = vpop.eup %1157 }
 0x530   : > { %v517_v18 = vadd.f32 1.0, %v1158_v17  ;;  %v632_v17 = vadd.f32 %v1300_v10, %v631_v16 }
 0x532   : > { %1159 = vrcp.f32 %v517_v18  ;;  %v529_v24 = vand.u32 2147483648, %v517_v18  ;;  %vm523_vm10 = vweird.f32 %v517_v18  ;;  %v527_v25 = vand.u32 2147483647, %v517_v18 }
 0x534   : > { %v530_v27 = vor.u32 1.1754944e-38, %v529_v24  ;;  %vm528_vm12 = vcmp.eq.f32.partialorder %v527_v25, 8.507059e+37 }
 0x538   : > { %v1160_v19 = vpop.eup %1159 }
 0x539   : > { %v519_v20 = vmul.f32 %v1160_v19, %v517_v18  ;;  %vm524_vm9 = vweird.f32 %v1160_v19 }
 0x53a   : > { %vm525_vm11 = vmor %vm523_vm10, %vm524_vm9 }
 0x53b   : > { %v520_v21 = vsub.f32 1.0, %v519_v20 }
 0x53d   : > { %v521_v22 = vmul.f32 %v1160_v19, %v520_v21 }
 0x53f   : > { %v522_v23 = vadd.f32 %v1160_v19, %v521_v22 }
 0x541   : > { %v526_v26 = vsel %vm525_vm11, %v1160_v19, %v522_v23 }
 0x542   : > { %v531_v29 = vsel %vm528_vm12, %v530_v27, %v526_v26 }
 0x543   : > { %v545_v34 = vsub.f32 1.0, %v531_v29  ;;  %v551_v36 = vmul.f32 %v531_v29, %v1317_v4 }
 0x599   : > { %v536_v28 = vpop.permute.xlu1 %535 }
 0x59a   : > { %v538_v30 = vmul.f32 %v536_v28, %v531_v29 }
 0x59c   : > { %540 = vrot.lane.b32.xlu2 %v538_v30, %s1218_s7 }
 0x5f6   : > { %v541_v31 = vpop.permute.xlu2 %540 }
 0x5f7   : > { %v543_v32 = vadd.f32 %v541_v31, %v492_v14 }
 0x5f9   : > { %1161 = vtanh.f32 %v543_v32 }
 0x5ff   : > { %v1162_v33 = vpop.eup %1161 }
 0x600   : > { %547 = vrot.lane.b32.xlu0 %v1162_v33, %s1221_s14 }
 0x672   : > { %v548_v35 = vpop.permute.xlu0 %547 }
 0x673   : > { %v550_v38 = vmul.f32 %v548_v35, %v545_v34 }
 0x675   : > { %v1330_v39 = vadd.f32 %v551_v36, %v550_v38 }
 0x677   : > { %v563_v40 = vpack.c.bf16 %v1330_v39, %v1330_v39 }
 0x679   : > { %565 = vrot.lane.b32.xlu1 %v563_v40, %s1221_s14 }
 0x6eb   : > { %v566_v41 = vpop.permute.xlu1 %565 }
 0x6ec   : > { %1089 = vmatmul.msk.bf16.vlgmr.msra.gmra.mxu3 %vm328_vm0, %v566_v41 }
 0x76f   : > { %v579_v42 = vpop.f32.mrf.mxu3 }
 0x770   : > { %v603_v43 = vadd.f32 %v579_v42, %v1289_v5  ;;  %v583_v47 = vadd.f32 %v579_v42, %v562_v46 }
 0x772   : > { %605 = vrot.lane.b32.xlu2 %v603_v43, %s1220_s9  ;;  %v1090_v48 = vmul.f32 -1.442695, %v583_v47 }
 0x774   : > { %1163 = vpow2.f32 %v1090_v48 }
 0x777   : > { %v581_v44 = vpop.f32.mrf.mxu3 }
 0x77a   : > { %v1164_v49 = vpop.eup %1163 }
 0x77b   : > { %v587_v50 = vadd.f32 1.0, %v1164_v49  ;;  %v701_v49 = vunpack.c.h.bf16 %v1092_v15 }
 0x77d   : > { %1165 = vrcp.f32 %v587_v50  ;;  %v599_v56 = vand.u32 2147483648, %v587_v50  ;;  %vm593_vm14 = vweird.f32 %v587_v50  ;;  %v597_v57 = vand.u32 2147483647, %v587_v50 }
 0x77f   : > { %v600_v59 = vor.u32 1.1754944e-38, %v599_v56  ;;  %vm598_vm1 = vcmp.eq.f32.partialorder %v597_v57, 8.507059e+37 }
 0x783   : > { %v1166_v51 = vpop.eup %1165 }
 0x784   : > { %v589_v52 = vmul.f32 %v1166_v51, %v587_v50  ;;  %vm594_vm13 = vweird.f32 %v1166_v51  ;;  %v702_v50 = vadd.f32 %v1300_v10, %v701_v49 }
 0x785   : > { %vm595_vm15 = vmor %vm593_vm14, %vm594_vm13 }
 0x786   : > { %v590_v53 = vsub.f32 1.0, %v589_v52 }
 0x788   : > { %v591_v54 = vmul.f32 %v1166_v51, %v590_v53 }
 0x78a   : > { %v592_v55 = vadd.f32 %v1166_v51, %v591_v54 }
 0x78c   : > { %v596_v58 = vsel %vm595_vm15, %v1166_v51, %v592_v55 }
 0x78d   : > { %v601_v61 = vsel %vm598_vm1, %v600_v59, %v596_v58 }
 0x78e   : > { %v615_v2 = vsub.f32 1.0, %v601_v61  ;;  %v621_v6 = vmul.f32 %v601_v61, %v1330_v39 }
 0x7cc   : > { %v606_v60 = vpop.permute.xlu2 %605 }
 0x7cd   : > { %v608_v62 = vmul.f32 %v606_v60, %v601_v61 }
 0x7cf   : > { %610 = vrot.lane.b32.xlu0 %v608_v62, %s1218_s7 }
 0x841   : > { %v611_v63 = vpop.permute.xlu0 %610 }
 0x842   : > { %v613_v0 = vadd.f32 %v611_v63, %v562_v46 }
 0x844   : > { %1167 = vtanh.f32 %v613_v0 }
 0x84a   : > { %v1168_v1 = vpop.eup %1167 }
 0x84b   : > { %617 = vrot.lane.b32.xlu1 %v1168_v1, %s1221_s14 }
 0x8bd   : > { %v618_v3 = vpop.permute.xlu1 %617 }
 0x8be   : > { %v620_v7 = vmul.f32 %v618_v3, %v615_v2 }
 0x8c0   : > { %v1342_v8 = vadd.f32 %v621_v6, %v620_v7 }
 0x8c2   : > { %v633_v9 = vpack.c.bf16 %v1342_v8, %v1342_v8 }
 0x8c4   : > { %635 = vrot.lane.b32.xlu2 %v633_v9, %s1221_s14 }
 0x91e   : > { %v636_v11 = vpop.permute.xlu2 %635 }
 0x91f   : > { %1093 = vmatmul.msk.bf16.vlgmr.msrb.gmra.mxu0 %vm328_vm0, %v636_v11 }
 0x99c   : > { %v649_v12 = vpop.f32.mrf.mxu0 }
 0x99d   : > { %v673_v13 = vadd.f32 %v649_v12, %v1289_v5  ;;  %v653_v18 = vadd.f32 %v649_v12, %v632_v17 }
 0x99f   : > { %675 = vrot.lane.b32.xlu0 %v673_v13, %s1220_s9  ;;  %v1094_v19 = vmul.f32 -1.442695, %v653_v18 }
 0x9a1   : > { %1169 = vpow2.f32 %v1094_v19 }
 0x9a4   : > { %v651_v14 = vpop.f32.mrf.mxu0 }
 0x9a7   : > { %v1170_v20 = vpop.eup %1169 }
 0x9a8   : > { %v657_v21 = vadd.f32 1.0, %v1170_v20  ;;  %v1100_v20 = vld [vmem:[%s1297_s13 + $0x18] sm:$0xff]  }
 0x9aa   : > { %1171 = vrcp.f32 %v657_v21  ;;  %v669_v27 = vand.u32 2147483648, %v657_v21  ;;  %vm663_vm3 = vweird.f32 %v657_v21  ;;  %v667_v28 = vand.u32 2147483647, %v657_v21 }
 0x9ac   : > { %v670_v30 = vor.u32 1.1754944e-38, %v669_v27  ;;  %vm668_vm5 = vcmp.eq.f32.partialorder %v667_v28, 8.507059e+37 }
 0x9b0   : > { %v1172_v22 = vpop.eup %1171 }
 0x9b1   : > { %v659_v23 = vmul.f32 %v1172_v22, %v657_v21  ;;  %vm664_vm2 = vweird.f32 %v1172_v22  ;;  %v771_v21 = vunpack.c.l.bf16 %v1100_v20 }
 0x9b2   : > { %vm665_vm4 = vmor %vm663_vm3, %vm664_vm2 }
 0x9b3   : > { %v660_v24 = vsub.f32 1.0, %v659_v23 }
 0x9b5   : > { %v661_v25 = vmul.f32 %v1172_v22, %v660_v24 }
 0x9b7   : > { %v662_v26 = vadd.f32 %v1172_v22, %v661_v25 }
 0x9b9   : > { %v666_v29 = vsel %vm665_vm4, %v1172_v22, %v662_v26  ;;  %v772_v22 = vadd.f32 %v1300_v10, %v771_v21 }
 0x9ba   : > { %v671_v32 = vsel %vm668_vm5, %v670_v30, %v666_v29 }
 0x9bb   : > { %v685_v38 = vsub.f32 1.0, %v671_v32  ;;  %v691_v41 = vmul.f32 %v671_v32, %v1342_v8 }
 0xa11   : > { %v676_v31 = vpop.permute.xlu0 %675 }
 0xa12   : > { %v678_v33 = vmul.f32 %v676_v31, %v671_v32 }
 0xa14   : > { %680 = vrot.lane.b32.xlu1 %v678_v33, %s1218_s7 }
 0xa86   : > { %v681_v34 = vpop.permute.xlu1 %680 }
 0xa87   : > { %v683_v35 = vadd.f32 %v681_v34, %v632_v17 }
 0xa89   : > { %1173 = vtanh.f32 %v683_v35 }
 0xa8f   : > { %v1174_v36 = vpop.eup %1173 }
 0xa90   : > { %687 = vrot.lane.b32.xlu2 %v1174_v36, %s1221_s14 }
 0xaea   : > { %v688_v40 = vpop.permute.xlu2 %687 }
 0xaeb   : > { %v690_v42 = vmul.f32 %v688_v40, %v685_v38 }
 0xaed   : > { %v1355_v43 = vadd.f32 %v691_v41, %v690_v42 }
 0xaef   : > { %v703_v44 = vpack.c.bf16 %v1355_v43, %v1355_v43 }
 0xaf1   : > { %705 = vrot.lane.b32.xlu0 %v703_v44, %s1221_s14 }
 0xb63   : > { %v706_v45 = vpop.permute.xlu0 %705 }
 0xb64   : > { %1097 = vmatmul.msk.bf16.vlgmr.msrb.gmra.mxu1 %vm328_vm0, %v706_v45 }
 0xbe1   : > { %v719_v46 = vpop.f32.mrf.mxu1 }
 0xbe2   : > { %v743_v47 = vadd.f32 %v719_v46, %v1289_v5  ;;  %v723_v51 = vadd.f32 %v719_v46, %v702_v50 }
 0xbe4   : > { %745 = vrot.lane.b32.xlu1 %v743_v47, %s1220_s9  ;;  %v1098_v52 = vmul.f32 -1.442695, %v723_v51 }
 0xbe6   : > { %1175 = vpow2.f32 %v1098_v52 }
 0xbe9   : > { %v721_v48 = vpop.f32.mrf.mxu1 }
 0xbec   : > { %v1176_v53 = vpop.eup %1175 }
 0xbed   : > { %v727_v54 = vadd.f32 1.0, %v1176_v53 }
 0xbef   : > { %1177 = vrcp.f32 %v727_v54  ;;  %v739_v60 = vand.u32 2147483648, %v727_v54  ;;  %vm733_vm7 = vweird.f32 %v727_v54  ;;  %v737_v61 = vand.u32 2147483647, %v727_v54 }
 0xbf1   : > { %v740_v63 = vor.u32 1.1754944e-38, %v739_v60  ;;  %vm738_vm9 = vcmp.eq.f32.partialorder %v737_v61, 8.507059e+37 }
 0xbf5   : > { %v1178_v55 = vpop.eup %1177 }
 0xbf6   : > { %v729_v56 = vmul.f32 %v1178_v55, %v727_v54  ;;  %vm734_vm6 = vweird.f32 %v1178_v55 }
 0xbf7   : > { %vm735_vm8 = vmor %vm733_vm7, %vm734_vm6 }
 0xbf8   : > { %v730_v57 = vsub.f32 1.0, %v729_v56 }
 0xbfa   : > { %v731_v58 = vmul.f32 %v1178_v55, %v730_v57 }
 0xbfc   : > { %v732_v59 = vadd.f32 %v1178_v55, %v731_v58 }
 0xbfe   : > { %v736_v62 = vsel %vm735_vm8, %v1178_v55, %v732_v59  ;;  %v841_v55 = vunpack.c.h.bf16 %v1100_v20 }
 0xbff   : > { %v741_v1 = vsel %vm738_vm9, %v740_v63, %v736_v62 }
 0xc00   : > { %v755_v9 = vsub.f32 1.0, %v741_v1  ;;  %v761_v12 = vmul.f32 %v741_v1, %v1355_v43  ;;  %v842_v56 = vadd.f32 %v1300_v10, %v841_v55 }
 0xc56   : > { %v746_v0 = vpop.permute.xlu1 %745 }
 0xc57   : > { %v748_v2 = vmul.f32 %v746_v0, %v741_v1 }
 0xc59   : > { %750 = vrot.lane.b32.xlu2 %v748_v2, %s1218_s7 }
 0xcb3   : > { %v751_v3 = vpop.permute.xlu2 %750 }
 0xcb4   : > { %v753_v6 = vadd.f32 %v751_v3, %v702_v50 }
 0xcb6   : > { %1179 = vtanh.f32 %v753_v6 }
 0xcbc   : > { %v1180_v7 = vpop.eup %1179 }
 0xcbd   : > { %757 = vrot.lane.b32.xlu0 %v1180_v7, %s1221_s14 }
 0xd2f   : > { %v758_v11 = vpop.permute.xlu0 %757 }
 0xd30   : > { %v760_v13 = vmul.f32 %v758_v11, %v755_v9 }
 0xd32   : > { %v1367_v14 = vadd.f32 %v761_v12, %v760_v13 }
 0xd34   : > { %v773_v15 = vpack.c.bf16 %v1367_v14, %v1367_v14 }
 0xd36   : > { %775 = vrot.lane.b32.xlu1 %v773_v15, %s1221_s14 }
 0xda8   : > { %v776_v16 = vpop.permute.xlu1 %775 }
 0xda9   : > { %1101 = vmatmul.msk.bf16.vlgmr.msrb.gmra.mxu2 %vm328_vm0, %v776_v16 }
 0xe2c   : > { %v789_v17 = vpop.f32.mrf.mxu2 }
 0xe2d   : > { %v813_v18 = vadd.f32 %v789_v17, %v1289_v5  ;;  %v793_v23 = vadd.f32 %v789_v17, %v772_v22 }
 0xe2f   : > { %815 = vrot.lane.b32.xlu2 %v813_v18, %s1220_s9  ;;  %v1102_v24 = vmul.f32 -1.442695, %v793_v23 }
 0xe31   : > { %1181 = vpow2.f32 %v1102_v24 }
 0xe34   : > { %v791_v19 = vpop.f32.mrf.mxu2 }
 0xe37   : > { %v1182_v25 = vpop.eup %1181 }
 0xe38   : > { %v797_v26 = vadd.f32 1.0, %v1182_v25 }
 0xe3a   : > { %1183 = vrcp.f32 %v797_v26  ;;  %v809_v32 = vand.u32 2147483648, %v797_v26  ;;  %vm803_vm11 = vweird.f32 %v797_v26  ;;  %v807_v33 = vand.u32 2147483647, %v797_v26 }
 0xe3c   : > { %v810_v35 = vor.u32 1.1754944e-38, %v809_v32  ;;  %vm808_vm13 = vcmp.eq.f32.partialorder %v807_v33, 8.507059e+37 }
 0xe40   : > { %v1184_v27 = vpop.eup %1183 }
 0xe41   : > { %v799_v28 = vmul.f32 %v1184_v27, %v797_v26  ;;  %vm804_vm10 = vweird.f32 %v1184_v27 }
 0xe42   : > { %vm805_vm12 = vmor %vm803_vm11, %vm804_vm10 }
 0xe43   : > { %v800_v29 = vsub.f32 1.0, %v799_v28 }
 0xe45   : > { %v801_v30 = vmul.f32 %v1184_v27, %v800_v29 }
 0xe47   : > { %v802_v31 = vadd.f32 %v1184_v27, %v801_v30 }
 0xe49   : > { %v806_v34 = vsel %vm805_vm12, %v1184_v27, %v802_v31 }
 0xe4a   : > { %v811_v38 = vsel %vm808_vm13, %v810_v35, %v806_v34 }
 0xe4b   : > { %v825_v45 = vsub.f32 1.0, %v811_v38  ;;  %v831_v47 = vmul.f32 %v811_v38, %v1367_v14 }
 0xe89   : > { %v816_v36 = vpop.permute.xlu2 %815 }
 0xe8a   : > { %v818_v40 = vmul.f32 %v816_v36, %v811_v38 }
 0xe8c   : > { %820 = vrot.lane.b32.xlu0 %v818_v40, %s1218_s7 }
 0xefe   : > { %v821_v41 = vpop.permute.xlu0 %820 }
 0xeff   : > { %v823_v42 = vadd.f32 %v821_v41, %v772_v22 }
 0xf01   : > { %1185 = vtanh.f32 %v823_v42 }
 0xf07   : > { %v1186_v44 = vpop.eup %1185 }
 0xf08   : > { %827 = vrot.lane.b32.xlu1 %v1186_v44, %s1221_s14 }
 0xf7a   : > { %v828_v46 = vpop.permute.xlu1 %827 }
 0xf7b   : > { %v830_v48 = vmul.f32 %v828_v46, %v825_v45 }
 0xf7d   : > { %v832_v49 = vadd.f32 %v831_v47, %v830_v48 }
 0xf7f   : > { %v843_v50 = vpack.c.bf16 %v832_v49, %v832_v49 }
 0xf81   : > { %845 = vrot.lane.b32.xlu2 %v843_v50, %s1221_s14 }
 0xfdb   : > { %v846_v51 = vpop.permute.xlu2 %845 }
 0xfdc   : > { %1105 = vmatmul.msk.bf16.vlgmr.msrb.gmra.mxu3 %vm328_vm0, %v846_v51 }
0x105f   : > { %v859_v52 = vpop.f32.mrf.mxu3 }
0x1060   : > { %v883_v53 = vadd.f32 %v859_v52, %v1289_v5  ;;  %v863_v57 = vadd.f32 %v859_v52, %v842_v56 }
0x1062   : > { %885 = vrot.lane.b32.xlu0 %v883_v53, %s1220_s9  ;;  %v1106_v58 = vmul.f32 -1.442695, %v863_v57 }
0x1064   : > { %1187 = vpow2.f32 %v1106_v58 }
0x1067   : > { %v861_v54 = vpop.f32.mrf.mxu3 }
0x106a   : > { %415 = vrot.lane.b32.xlu0 %v1305_v37, %s1221_s14  ;;  %v1188_v59 = vpop.eup %1187 }
0x106b   : > { %v867_v60 = vadd.f32 1.0, %v1188_v59 }
0x106d   : > { %1189 = vrcp.f32 %v867_v60  ;;  %v879_v0 = vand.u32 2147483648, %v867_v60  ;;  %vm873_vm15 = vweird.f32 %v867_v60 }
0x106f   : > { %v880_v2 = vor.u32 1.1754944e-38, %v879_v0 }
0x1072   : > { %624 = vrot.lane.b32.xlu0 %v1342_v8, %s1221_s14  ;;  %v877_v8 = vand.u32 2147483647, %v867_v60 }
0x1073   : > { %v1190_v5 = vpop.eup %1189 }
0x1074   : > { %v869_v61 = vmul.f32 %v1190_v5, %v867_v60  ;;  %vm874_vm14 = vweird.f32 %v1190_v5  ;;  %vm878_vm2 = vcmp.eq.f32.partialorder %v877_v8, 8.507059e+37 }
0x1075   : > { %vm875_vm1 = vmor %vm873_vm15, %vm874_vm14 }
0x1076   : > { %v870_v62 = vsub.f32 1.0, %v869_v61 }
0x1078   : > { %v871_v63 = vmul.f32 %v1190_v5, %v870_v62 }
0x107a   : > { %834 = vrot.lane.b32.xlu0 %v832_v49, %s1221_s14  ;;  %v872_v37 = vadd.f32 %v1190_v5, %v871_v63 }
0x107c   : > { %v876_v1 = vsel %vm875_vm1, %v1190_v5, %v872_v37 }
0x107d   : > { %v881_v3 = vsel %vm878_vm2, %v880_v2, %v876_v1 }
0x107e   : > { %v901_v18 = vmul.f32 %v881_v3, %v832_v49 }
0x10d4   : > { %v886_v10 = vpop.permute.xlu0 %885 }
0x10d5   : > { %v888_v6 = vmul.f32 %v886_v10, %v881_v3 }
0x10d7   : > { %890 = vrot.lane.b32.xlu1 %v888_v6, %s1218_s7 }
0x10dc   : > { %v416_v7 = vpop.permute.xlu0 %415 }
0x10dd   : > { %418 = vst.msk [vmem:[%s1395_s23] sm:$0xff] %vm328_vm0, %v416_v7 }
0x10df   : > { %484 = vrot.lane.b32.xlu1 %v1317_v4, %s1221_s14 }
0x10e4   : > { %v625_v9 = vpop.permute.xlu0 %624 }
0x10e5   : > { %1091 = vst.msk [vmem:[%s1395_s23 + $0x18] sm:$0xff] %vm328_vm0, %v625_v9 }
0x10e7   : > { %694 = vrot.lane.b32.xlu1 %v1355_v43, %s1221_s14  ;;  %v895_v43 = vsub.f32 1.0, %v881_v3 }
0x10ec   : > { %v835_v11 = vpop.permute.xlu0 %834 }
0x10ed   : > { %1103 = vst.msk [vmem:[%s1395_s23 + $0x30] sm:$0xff] %vm328_vm0, %v835_v11 }
0x1149   : > { %v891_v12 = vpop.permute.xlu1 %890 }
0x114a   : > { %v893_v13 = vadd.f32 %v891_v12, %v842_v56 }
0x114c   : > { %1191 = vtanh.f32 %v893_v13 }
0x1151   : > { %v485_v15 = vpop.permute.xlu1 %484 }
0x1152   : > { %v1192_v16 = vpop.eup %1191  ;;  %1083 = vst.msk [vmem:[%s1395_s23 + $0x8] sm:$0xff] %vm328_vm0, %v485_v15 }
0x1153   : > { %897 = vrot.lane.b32.xlu2 %v1192_v16, %s1221_s14 }
0x1159   : > { %v695_v4 = vpop.permute.xlu1 %694 }
0x115a   : > { %1095 = vst.msk [vmem:[%s1395_s23 + $0x20] sm:$0xff] %vm328_vm0, %v695_v4 }
0x115b   : > { %554 = vrot.lane.b32.xlu2 %v1330_v39, %s1221_s14 }
0x1163   : > { %764 = vrot.lane.b32.xlu2 %v1367_v14, %s1221_s14 }
0x11ad   : > { %v898_v17 = vpop.permute.xlu2 %897 }
0x11ae   : > { %v900_v19 = vmul.f32 %v898_v17, %v895_v43 }
0x11b0   : > { %v902_v20 = vadd.f32 %v901_v18, %v900_v19 }
0x11b2   : > { %904 = vrot.lane.b32.xlu1 %v902_v20, %s1221_s14 }
0x11b5   : > { %v555_v21 = vpop.permute.xlu2 %554 }
0x11b6   : > { %1087 = vst.msk [vmem:[%s1395_s23 + $0x10] sm:$0xff] %vm328_vm0, %v555_v21 }
0x11bd   : > { %v765_v22 = vpop.permute.xlu2 %764 }
0x11be   : > { %1099 = vst.msk [vmem:[%s1395_s23 + $0x28] sm:$0xff] %vm328_vm0, %v765_v22 }
0x1224   : > { %v905_v39 = vpop.permute.xlu1 %904 }
0x1225   : > { %1107 = vst.msk [vmem:[%s1395_s23 + $0x38] sm:$0xff] %vm328_vm0, %v905_v39 }
0x1226   : > { %909 = vst.msk [vmem:[#allocation2] sm:$0xff] %vm328_vm0, %v905_v39 }
0x1227   : > { %913 = vst.msk [vmem:[%s322_s26] sm:$0xff] %vm328_vm0, %v905_v39 }
0x1228 PF: > { %s16_s20 = sadd.s32 1, %s1215_s20   ;;  %s1445_s18 = smov %s1211_s19 }
0x1229   : > { %p13_p5 = scmp.ge.s32.totalorder %s16_s20, 4   ;;  %s1446_s19 = smov %s1448_s21 }
0x122b   :  { %15 = sbr.rel (!%p13_p5) target bundleno = 2 (0x2), region = 109 }

</bundles_post_ra>
